<compile_context>
chip_gen: v7x
topology: tpu7x:2x2x1
jax: 0.10.0
libtpu: 0.0.40
codegen_flags: <defaults>
</compile_context>

<pallas_src>
import functools

import jax
import jax.numpy as jnp
from jax.experimental import pallas as pl
from jax.experimental.pallas import tpu as pltpu


NEG_SLOPE = 0.01           # F.leaky_relu default
_MIN_SPLIT_BATCH = 256     # below this, one fat grid step beats splitting


def _leaky_relu(x):
    return jnp.where(x >= 0, x, NEG_SLOPE * x)


def _round_up(n, m):
    return ((n + m - 1) // m) * m


def dense_policy_kernel(
    x_ref,
    w1_ref, b1_ref,
    w2_ref, b2_ref,
    w3_ref, b3_ref,
    whead_ref, bhead_ref,
    out_ref,
    *,
    action_nums,
):
    x = x_ref[...]

    # dense1 -> (dropout: identity) -> leaky_relu
    h = jnp.dot(x, w1_ref[...], preferred_element_type=jnp.float32) + b1_ref[...]
    h = _leaky_relu(h)

    # dense2 -> leaky_relu
    h = jnp.dot(h, w2_ref[...], preferred_element_type=jnp.float32) + b2_ref[...]
    h = _leaky_relu(h)

    # dense3 -> leaky_relu
    h = jnp.dot(h, w3_ref[...], preferred_element_type=jnp.float32) + b3_ref[...]
    h = _leaky_relu(h)

    # Fused (action_head | value_head | zero pad) in one MXU pass -> [TB, 128]
    y = jnp.dot(h, whead_ref[...], preferred_element_type=jnp.float32) + bhead_ref[...]

    # Lane mask: lanes < A are action logits; lane A is the value; rest is pad.
    lane = jax.lax.broadcasted_iota(jnp.int32, y.shape, 1)
    is_action = lane < action_nums

    # Numerically-stable masked softmax over the action lanes (no lane slicing).
    masked_logits = jnp.where(is_action, y, -jnp.inf)
    m = jnp.max(masked_logits, axis=-1, keepdims=True)
    e = jnp.exp(masked_logits - m)            # pad / value lanes -> exp(-inf) = 0
    s = jnp.sum(e, axis=-1, keepdims=True)
    r = pl.reciprocal(s, approx=True)         # EUP vrcp (free slot)
    r = r * (2.0 - s * r)                     # one Newton step -> ~exact 1/s
    probs = e * r

    # Single unmasked, lane-dense [TB, 128] store: probs in lanes <A, value in
    # lane A, zeros in pad lanes (head pad columns are zero).
    out_ref[...] = jnp.where(is_action, probs, y)


def fuse_heads(params):
    """Precompute the fused, 128-lane-padded head once (hoisted out of forward)."""
    if "whead" in params:
        return params
    A = params["wa"].shape[1]
    out_lanes = max(128, _round_up(A + 1, 128))
    whead = jnp.concatenate([params["wa"], params["wv"]], axis=1)   # [8A, A+1]
    bhead = jnp.concatenate([params["ba"], params["bv"]], axis=1)   # [1,  A+1]
    pad = out_lanes - (A + 1)
    whead = jnp.pad(whead, ((0, 0), (0, pad)))
    bhead = jnp.pad(bhead, ((0, 0), (0, pad)))
    fused = dict(params)
    fused["whead"] = whead
    fused["bhead"] = bhead
    return fused


def _select_tb(B, block_batch):
    """Batch tile size: one fat step for small B, >=2 steps (v7x megacore) otherwise."""
    if B < _MIN_SPLIT_BATCH:
        return B  # block == full batch dim (satisfies the (8,128) rule)
    half = _round_up((B + 1) // 2, 8)
    return min(_round_up(block_batch, 8), half)


def dense_policy_forward(x, params, *, block_batch=1024):
    """x: [B, input_features] float32.  params: dict of weights/biases.

    Returns (probs [B, A], value [B, 1]).
    """
    params = fuse_heads(params)

    B, F = x.shape
    A = params["wa"].shape[1]
    out_lanes = params["whead"].shape[1]

    TB = _select_tb(B, block_batch)
    grid = (pl.cdiv(B, TB),)

    operands = (
        x,
        params["w1"], params["b1"],
        params["w2"], params["b2"],
        params["w3"], params["b3"],
        params["whead"], params["bhead"],
    )

    # Batch-tiled activation stream; weights/biases resident (constant blocks).
    in_specs = [pl.BlockSpec((TB, F), lambda i: (i, 0))]
    in_specs += [pl.BlockSpec(a.shape, lambda i: (0, 0)) for a in operands[1:]]

    out_shape = jax.ShapeDtypeStruct((B, out_lanes), jnp.float32)
    out_specs = pl.BlockSpec((TB, out_lanes), lambda i: (i, 0))

    # VMEM budget: every narrow block lane-pads to 128 (512 B/row f32); count
    # x/out double buffers + live intermediates at ~6 KB per batch row, plus
    # ~2 MB for resident weights and headroom.  Cap below v7x's 64 MiB physical.
    est_bytes = TB * 6 * 1024 + (2 << 20)
    vmem_limit = int(min(max(est_bytes, 16 << 20), 48 << 20))

    kernel = functools.partial(dense_policy_kernel, action_nums=A)

    out = pl.pallas_call(
        kernel,
        grid=grid,
        in_specs=in_specs,
        out_specs=out_specs,
        out_shape=out_shape,
        compiler_params=pltpu.CompilerParams(
            dimension_semantics=("parallel",),  # megacore sharding on v7x
            vmem_limit_bytes=vmem_limit,
        ),
    )(*operands)

    probs = out[:, :A]
    value = out[:, A:A + 1]
    return probs, value


def init_params(key, input_features, action_nums):
    """Deterministic init mimicking nn.Linear shapes (stored as [in, out])."""
    dims = [
        (input_features, input_features * 16),    # dense1
        (input_features * 16, action_nums * 32),  # dense2
        (action_nums * 32, action_nums * 8),      # dense3
        (action_nums * 8, action_nums),           # action_head
        (action_nums * 8, 1),                     # value_head
    ]
    names = ["1", "2", "3", "a", "v"]
    params = {}
    for name, (d_in, d_out) in zip(names, dims):
        key, kw, kb = jax.random.split(key, 3)
        bound = 1.0 / jnp.sqrt(jnp.float32(d_in))
        params["w" + name] = jax.random.uniform(
            kw, (d_in, d_out), jnp.float32, minval=-bound, maxval=bound)
        params["b" + name] = jax.random.uniform(
            kb, (1, d_out), jnp.float32, minval=-bound, maxval=bound)
    return params


def reference_forward(x, params):
    """Pure-JAX reference (eval mode) for sanity checking."""
    h = x
    for name in ["1", "2", "3"]:
        h = jnp.dot(h, params["w" + name]) + params["b" + name]
        h = jnp.where(h >= 0, h, NEG_SLOPE * h)
    logits = jnp.dot(h, params["wa"]) + params["ba"]
    probs = jax.nn.softmax(logits, axis=-1)
    value = jnp.dot(h, params["wv"]) + params["bv"]
    return probs, value


def _check(fwd, x, params, action_nums):
    probs, value = fwd(x, params)
    jax.block_until_ready((probs, value))
    probs_ref, value_ref = reference_forward(x, params)
    B = x.shape[0]
    assert probs.shape == (B, action_nums)
    assert value.shape == (B, 1)
    assert jnp.allclose(probs, probs_ref, atol=1e-5, rtol=1e-5)
    assert jnp.allclose(value, value_ref, atol=1e-5, rtol=1e-5)
    assert jnp.allclose(jnp.sum(probs, axis=-1), 1.0, atol=1e-5)


if __name__ == "__main__":
    input_features = 8
    action_nums = 4

    key = jax.random.PRNGKey(0)
    key, kx_small, kx_mid, kx_pad = jax.random.split(key, 4)
    params = fuse_heads(init_params(key, input_features, action_nums))

    fwd = jax.jit(functools.partial(dense_policy_forward, block_batch=1024))

    # Small-batch RL case: single grid step, block == whole batch.
    x_small = jax.random.normal(kx_small, (2, input_features), jnp.float32)
    _check(fwd, x_small, params, action_nums)

    # Two exact tiles of 128: exercises the >=2-step parallel batch grid.
    x_mid = jax.random.normal(kx_mid, (256, input_features), jnp.float32)
    _check(fwd, x_mid, params, action_nums)

    # Non-multiple batch: exercises the padded last tile + masked writeback.
    x_pad = jax.random.normal(kx_pad, (300, input_features), jnp.float32)
    _check(fwd, x_pad, params, action_nums)

    print("KERNEL_OK")
</pallas_src>

<mosaic_0001>
module attributes {stable_mosaic.version = 11 : i64} {
  func.func @dense_policy_kernel(%arg0: i32, %arg1: memref<2x8xf32, #tpu.memory_space<vmem>>, %arg2: memref<8x128xf32, #tpu.memory_space<vmem>>, %arg3: memref<1x128xf32, #tpu.memory_space<vmem>>, %arg4: memref<128x128xf32, #tpu.memory_space<vmem>>, %arg5: memref<1x128xf32, #tpu.memory_space<vmem>>, %arg6: memref<128x32xf32, #tpu.memory_space<vmem>>, %arg7: memref<1x32xf32, #tpu.memory_space<vmem>>, %arg8: memref<32x128xf32, #tpu.memory_space<vmem>>, %arg9: memref<1x128xf32, #tpu.memory_space<vmem>>, %arg10: memref<2x128xf32, #tpu.memory_space<vmem>>) attributes {dimension_semantics = [#tpu.dimension_semantics<parallel>], iteration_bounds = array<i64: 1>, scalar_prefetch = 0 : i64, scratch_operands = 0 : i64, tpu.core_type = #tpu.core_type<tc>, window_params = [{transform_indices = @transform_0, window_bounds = array<i64: 2, 8>}, {pipeline_mode = #tpu.pipeline_mode<synchronous>, transform_indices = @transform_1, window_bounds = array<i64: 8, 128>}, {pipeline_mode = #tpu.pipeline_mode<synchronous>, transform_indices = @transform_2, window_bounds = array<i64: 1, 128>}, {pipeline_mode = #tpu.pipeline_mode<synchronous>, transform_indices = @transform_3, window_bounds = array<i64: 128, 128>}, {pipeline_mode = #tpu.pipeline_mode<synchronous>, transform_indices = @transform_4, window_bounds = array<i64: 1, 128>}, {pipeline_mode = #tpu.pipeline_mode<synchronous>, transform_indices = @transform_5, window_bounds = array<i64: 128, 32>}, {pipeline_mode = #tpu.pipeline_mode<synchronous>, transform_indices = @transform_6, window_bounds = array<i64: 1, 32>}, {pipeline_mode = #tpu.pipeline_mode<synchronous>, transform_indices = @transform_7, window_bounds = array<i64: 32, 128>}, {pipeline_mode = #tpu.pipeline_mode<synchronous>, transform_indices = @transform_8, window_bounds = array<i64: 1, 128>}, {transform_indices = @transform_9, window_bounds = array<i64: 2, 128>}]} {
    %c0 = arith.constant 0 : index
    %c0_0 = arith.constant 0 : index
    %0 = vector.load %arg1[%c0, %c0_0] : memref<2x8xf32, #tpu.memory_space<vmem>>, vector<2x8xf32>
    %c0_1 = arith.constant 0 : index
    %c0_2 = arith.constant 0 : index
    %1 = vector.load %arg2[%c0_1, %c0_2] : memref<8x128xf32, #tpu.memory_space<vmem>>, vector<8x128xf32>
    %cst = arith.constant dense<0.000000e+00> : vector<2x128xf32>
    %2 = tpu.matmul %0, %1, %cst {dimension_numbers = #tpu.dot_dimension_numbers<[1], [0], [0], [1], [0, 0, 1, 1], [], []>} : vector<2x8xf32>, vector<8x128xf32>, vector<2x128xf32> -> vector<2x128xf32>
    %c0_3 = arith.constant 0 : index
    %c0_4 = arith.constant 0 : index
    %3 = vector.load %arg3[%c0_3, %c0_4] : memref<1x128xf32, #tpu.memory_space<vmem>>, vector<1x128xf32>
    %4 = vector.broadcast %3 : vector<1x128xf32> to vector<2x128xf32>
    %5 = arith.addf %2, %4 : vector<2x128xf32>
    %cst_5 = arith.constant 0.000000e+00 : f32
    %6 = vector.broadcast %cst_5 : f32 to vector<2x128xf32>
    %7 = arith.cmpf oge, %5, %6 : vector<2x128xf32>
    %cst_6 = arith.constant 0.00999999977 : f32
    %8 = vector.broadcast %cst_6 : f32 to vector<2x128xf32>
    %9 = arith.mulf %8, %5 : vector<2x128xf32>
    %10 = arith.select %7, %5, %9 : vector<2x128xi1>, vector<2x128xf32>
    %c0_7 = arith.constant 0 : index
    %c0_8 = arith.constant 0 : index
    %11 = vector.load %arg4[%c0_7, %c0_8] : memref<128x128xf32, #tpu.memory_space<vmem>>, vector<128x128xf32>
    %cst_9 = arith.constant dense<0.000000e+00> : vector<2x128xf32>
    %12 = tpu.matmul %10, %11, %cst_9 {dimension_numbers = #tpu.dot_dimension_numbers<[1], [0], [0], [1], [0, 0, 1, 1], [], []>} : vector<2x128xf32>, vector<128x128xf32>, vector<2x128xf32> -> vector<2x128xf32>
    %c0_10 = arith.constant 0 : index
    %c0_11 = arith.constant 0 : index
    %13 = vector.load %arg5[%c0_10, %c0_11] : memref<1x128xf32, #tpu.memory_space<vmem>>, vector<1x128xf32>
    %14 = vector.broadcast %13 : vector<1x128xf32> to vector<2x128xf32>
    %15 = arith.addf %12, %14 : vector<2x128xf32>
    %cst_12 = arith.constant 0.000000e+00 : f32
    %16 = vector.broadcast %cst_12 : f32 to vector<2x128xf32>
    %17 = arith.cmpf oge, %15, %16 : vector<2x128xf32>
    %cst_13 = arith.constant 0.00999999977 : f32
    %18 = vector.broadcast %cst_13 : f32 to vector<2x128xf32>
    %19 = arith.mulf %18, %15 : vector<2x128xf32>
    %20 = arith.select %17, %15, %19 : vector<2x128xi1>, vector<2x128xf32>
    %c0_14 = arith.constant 0 : index
    %c0_15 = arith.constant 0 : index
    %21 = vector.load %arg6[%c0_14, %c0_15] : memref<128x32xf32, #tpu.memory_space<vmem>>, vector<128x32xf32>
    %cst_16 = arith.constant dense<0.000000e+00> : vector<2x32xf32>
    %22 = tpu.matmul %20, %21, %cst_16 {dimension_numbers = #tpu.dot_dimension_numbers<[1], [0], [0], [1], [0, 0, 1, 1], [], []>} : vector<2x128xf32>, vector<128x32xf32>, vector<2x32xf32> -> vector<2x32xf32>
    %c0_17 = arith.constant 0 : index
    %c0_18 = arith.constant 0 : index
    %23 = vector.load %arg7[%c0_17, %c0_18] : memref<1x32xf32, #tpu.memory_space<vmem>>, vector<1x32xf32>
    %24 = vector.broadcast %23 : vector<1x32xf32> to vector<2x32xf32>
    %25 = arith.addf %22, %24 : vector<2x32xf32>
    %cst_19 = arith.constant 0.000000e+00 : f32
    %26 = vector.broadcast %cst_19 : f32 to vector<2x32xf32>
    %27 = arith.cmpf oge, %25, %26 : vector<2x32xf32>
    %cst_20 = arith.constant 0.00999999977 : f32
    %28 = vector.broadcast %cst_20 : f32 to vector<2x32xf32>
    %29 = arith.mulf %28, %25 : vector<2x32xf32>
    %30 = arith.select %27, %25, %29 : vector<2x32xi1>, vector<2x32xf32>
    %c0_21 = arith.constant 0 : index
    %c0_22 = arith.constant 0 : index
    %31 = vector.load %arg8[%c0_21, %c0_22] : memref<32x128xf32, #tpu.memory_space<vmem>>, vector<32x128xf32>
    %cst_23 = arith.constant dense<0.000000e+00> : vector<2x128xf32>
    %32 = tpu.matmul %30, %31, %cst_23 {dimension_numbers = #tpu.dot_dimension_numbers<[1], [0], [0], [1], [0, 0, 1, 1], [], []>} : vector<2x32xf32>, vector<32x128xf32>, vector<2x128xf32> -> vector<2x128xf32>
    %c0_24 = arith.constant 0 : index
    %c0_25 = arith.constant 0 : index
    %33 = vector.load %arg9[%c0_24, %c0_25] : memref<1x128xf32, #tpu.memory_space<vmem>>, vector<1x128xf32>
    %34 = vector.broadcast %33 : vector<1x128xf32> to vector<2x128xf32>
    %35 = arith.addf %32, %34 : vector<2x128xf32>
    %36 = tpu.iota {dimensions = array<i32: 1>} : vector<2x128xi32>
    %c4_i32 = arith.constant 4 : i32
    %37 = vector.broadcast %c4_i32 : i32 to vector<2x128xi32>
    %38 = arith.cmpi slt, %36, %37 : vector<2x128xi32>
    %cst_26 = arith.constant 0xFF800000 : f32
    %39 = vector.broadcast %cst_26 : f32 to vector<2x128xf32>
    %40 = arith.select %38, %35, %39 : vector<2x128xi1>, vector<2x128xf32>
    %cst_27 = arith.constant dense<0xFF800000> : vector<2xf32>
    %41 = vector.multi_reduction <maximumf>, %40, %cst_27 [1] : vector<2x128xf32> to vector<2xf32>
    %42 = vector.shape_cast %41 : vector<2xf32> to vector<2x1xf32>
    %43 = vector.broadcast %42 : vector<2x1xf32> to vector<2x128xf32>
    %44 = arith.subf %40, %43 : vector<2x128xf32>
    %45 = math.exp %44 : vector<2x128xf32>
    %cst_28 = arith.constant dense<0.000000e+00> : vector<2xf32>
    %46 = vector.multi_reduction <add>, %45, %cst_28 [1] : vector<2x128xf32> to vector<2xf32>
    %47 = vector.shape_cast %46 : vector<2xf32> to vector<2x1xf32>
    %48 = tpu.reciprocal %47 {approx = true} : vector<2x1xf32> -> vector<2x1xf32>
    %49 = arith.mulf %47, %48 : vector<2x1xf32>
    %cst_29 = arith.constant 2.000000e+00 : f32
    %50 = vector.broadcast %cst_29 : f32 to vector<2x1xf32>
    %51 = arith.subf %50, %49 : vector<2x1xf32>
    %52 = arith.mulf %48, %51 : vector<2x1xf32>
    %53 = vector.broadcast %52 : vector<2x1xf32> to vector<2x128xf32>
    %54 = arith.mulf %45, %53 : vector<2x128xf32>
    %55 = arith.select %38, %54, %35 : vector<2x128xi1>, vector<2x128xf32>
    %c0_30 = arith.constant 0 : index
    %c0_31 = arith.constant 0 : index
    %56 = vector.load %arg10[%c0_30, %c0_31] : memref<2x128xf32, #tpu.memory_space<vmem>>, vector<2x128xf32>
    tpu.vector_store %arg10[%c0_30, %c0_31], %55 {strides = array<i32>} : memref<2x128xf32, #tpu.memory_space<vmem>>, vector<2x128xf32>,
    return
  }
  func.func @transform_0(%arg0: i32) -> (i32, i32) {
    %c0_i32 = arith.constant 0 : i32
    %c0_i32_0 = arith.constant 0 : i32
    return %arg0, %c0_i32 : i32, i32
  }
  func.func @transform_1(%arg0: i32) -> (i32, i32) {
    %c0_i32 = arith.constant 0 : i32
    %c0_i32_0 = arith.constant 0 : i32
    %c0_i32_1 = arith.constant 0 : i32
    return %c0_i32, %c0_i32_0 : i32, i32
  }
  func.func @transform_2(%arg0: i32) -> (i32, i32) {
    %c0_i32 = arith.constant 0 : i32
    %c0_i32_0 = arith.constant 0 : i32
    %c0_i32_1 = arith.constant 0 : i32
    return %c0_i32, %c0_i32_0 : i32, i32
  }
  func.func @transform_3(%arg0: i32) -> (i32, i32) {
    %c0_i32 = arith.constant 0 : i32
    %c0_i32_0 = arith.constant 0 : i32
    %c0_i32_1 = arith.constant 0 : i32
    return %c0_i32, %c0_i32_0 : i32, i32
  }
  func.func @transform_4(%arg0: i32) -> (i32, i32) {
    %c0_i32 = arith.constant 0 : i32
    %c0_i32_0 = arith.constant 0 : i32
    %c0_i32_1 = arith.constant 0 : i32
    return %c0_i32, %c0_i32_0 : i32, i32
  }
  func.func @transform_5(%arg0: i32) -> (i32, i32) {
    %c0_i32 = arith.constant 0 : i32
    %c0_i32_0 = arith.constant 0 : i32
    %c0_i32_1 = arith.constant 0 : i32
    return %c0_i32, %c0_i32_0 : i32, i32
  }
  func.func @transform_6(%arg0: i32) -> (i32, i32) {
    %c0_i32 = arith.constant 0 : i32
    %c0_i32_0 = arith.constant 0 : i32
    %c0_i32_1 = arith.constant 0 : i32
    return %c0_i32, %c0_i32_0 : i32, i32
  }
  func.func @transform_7(%arg0: i32) -> (i32, i32) {
    %c0_i32 = arith.constant 0 : i32
    %c0_i32_0 = arith.constant 0 : i32
    %c0_i32_1 = arith.constant 0 : i32
    return %c0_i32, %c0_i32_0 : i32, i32
  }
  func.func @transform_8(%arg0: i32) -> (i32, i32) {
    %c0_i32 = arith.constant 0 : i32
    %c0_i32_0 = arith.constant 0 : i32
    %c0_i32_1 = arith.constant 0 : i32
    return %c0_i32, %c0_i32_0 : i32, i32
  }
  func.func @transform_9(%arg0: i32) -> (i32, i32) {
    %c0_i32 = arith.constant 0 : i32
    %c0_i32_0 = arith.constant 0 : i32
    return %arg0, %c0_i32 : i32, i32
  }
}

</mosaic_0001>

<bundles_post_ra>
// kernel: dense_policy_forward.1
= control target key start
LH: loop header
LB: loop body
LE: loop exit
PB: predicated region body
PF: predicated region fallthrough
CT: control target
= control target key end

     0   :  { %vm41_vm0 = vcmask 64512   ;;  %v614_v0 = vmov 0.0   ;;  %vm615_vm1 = vmmov 0   ;;  %v616_v4 = vmov 0.0|0.0   ;;  %s825_s1 = inlined_call_operand.vmem [shape: f32[8,128], index: 1, kind: input, shape index: {}]   ;;  %s826_s0 = inlined_call_operand.vmem [shape: f32[2,8], index: 0, kind: input, shape index: {}]   ;;  %s827_s3 = inlined_call_operand.vmem [shape: f32[128,128], index: 3, kind: input, shape index: {}]   ;;  %s828_s5 = inlined_call_operand.vmem [shape: f32[128,32], index: 5, kind: input, shape index: {}]   ;;  %s829_s2 = inlined_call_operand.vmem [shape: f32[1,128], index: 2, kind: input, shape index: {}]   ;;  %s830_s7 = inlined_call_operand.vmem [shape: f32[32,128], index: 7, kind: input, shape index: {}]   ;;  %s831_s4 = inlined_call_operand.vmem [shape: f32[1,128], index: 4, kind: input, shape index: {}]   ;;  %s832_s6 = inlined_call_operand.vmem [shape: f32[1,32], index: 6, kind: input, shape index: {}]   ;;  %s833_s8 = inlined_call_operand.vmem [shape: f32[1,128], index: 8, kind: input, shape index: {}]   ;;  %s834_s9 = inlined_call_operand.vmem [shape: f32[2,128], index: 9, kind: output, shape index: {}]  }
   0x1   :  { %467 = vmatprep.subr.mxu0 %v614_v0  ;;  %v33_v1 = vld [vmem:[%s825_s1] sm:$0xff]  ;;  %469 = vmatprep.mubr.msk.f32.mxu0 %vm615_vm1, %v614_v0  ;;  %v119_v5 = vld [vmem:[%s827_s3 + $0x8] sm:$0xff]  ;;  %v120_v6 = vld [vmem:[%s827_s3 + $0x10] sm:$0xff]  ;;  %vm321_vm5 = vcmask 261120   ;;  %vm399_vm7 = vcmask 1041408  }
   0x2   :  { %v32_v2 = vld [vmem:[%s826_s0] sm:$0x3]  ;;  %468 = vmatpush3.msra.mxu0 %v33_v1  ;;  %553 = vmatprep.subr.bf16.mxu1 %v616_v4  ;;  %v121_v7 = vld [vmem:[%s827_s3 + $0x18] sm:$0xff]  ;;  %v123_v11 = vld [vmem:[%s827_s3 + $0x28] sm:$0xff] }
   0x3   :  { %v118_v3 = vld [vmem:[%s827_s3] sm:$0xff]  ;;  %470 = vmatmul.mubr.msk.f32.vlgmr.msra.gmra.mrb[0].mxu0 %vm41_vm0, %v32_v2  ;;  %504 = vmatprep.mubr.msk.f32.mxu1 %vm615_vm1, %v614_v0  ;;  %v557_v9 = vpack.c.bf16 %v121_v7, %v120_v6  ;;  %v124_v13 = vld [vmem:[%s827_s3 + $0x30] sm:$0xff]  ;;  %v125_v14 = vld [vmem:[%s827_s3 + $0x38] sm:$0xff] }
   0x4   :  { %v554_v8 = vpack.c.bf16 %v119_v5, %v118_v3  ;;  %577 = vmatprep.subr.bf16.mxu0 %v616_v4  ;;  %539 = vmatprep.mubr.msk.f32.mxu0 %vm615_vm1, %v614_v0  ;;  %v122_v10 = vld [vmem:[%s827_s3 + $0x20] sm:$0xff]  ;;  %v563_v15 = vpack.c.bf16 %v125_v14, %v124_v13  ;;  %v127_v17 = vld [vmem:[%s827_s3 + $0x48] sm:$0xff]  ;;  %v128_v19 = vld [vmem:[%s827_s3 + $0x50] sm:$0xff] }
   0x5   :  { %v560_v12 = vpack.c.bf16 %v123_v11, %v122_v10  ;;  %v126_v16 = vld [vmem:[%s827_s3 + $0x40] sm:$0xff]  ;;  %v129_v20 = vld [vmem:[%s827_s3 + $0x58] sm:$0xff]  ;;  %v131_v23 = vld [vmem:[%s827_s3 + $0x68] sm:$0xff] }
   0x6   :  { %555 = vmatpush3.bf16.msra.mxu1 %v554_v8  ;;  %v566_v18 = vpack.c.bf16 %v127_v17, %v126_v16  ;;  %v569_v21 = vpack.c.bf16 %v129_v20, %v128_v19  ;;  %v130_v22 = vld [vmem:[%s827_s3 + $0x60] sm:$0xff]  ;;  %v132_v25 = vld [vmem:[%s827_s3 + $0x70] sm:$0xff]  ;;  %v133_v26 = vld [vmem:[%s827_s3 + $0x78] sm:$0xff] }
   0x7   :  { %556 = vmatprep.subr.bf16.mxu1 %v616_v4  ;;  %v572_v24 = vpack.c.bf16 %v131_v23, %v130_v22  ;;  %v575_v27 = vpack.c.bf16 %v133_v26, %v132_v25  ;;  %v214_v28 = vld [vmem:[%s828_s5] sm:$0xff]  ;;  %v215_v29 = vld [vmem:[%s828_s5 + $0x8] sm:$0xff]  ;;  %v216_v30 = vld [vmem:[%s828_s5 + $0x10] sm:$0xff] }
   0x8   :  { %v578_v31 = vpack.c.bf16 %v215_v29, %v214_v28  ;;  %v217_v32 = vld [vmem:[%s828_s5 + $0x18] sm:$0xff]  ;;  %v218_v34 = vld [vmem:[%s828_s5 + $0x20] sm:$0xff]  ;;  %v219_v35 = vld [vmem:[%s828_s5 + $0x28] sm:$0xff] }
   0x9   :  { %v581_v33 = vpack.c.bf16 %v217_v32, %v216_v30  ;;  %v584_v36 = vpack.c.bf16 %v219_v35, %v218_v34  ;;  %v220_v37 = vld [vmem:[%s828_s5 + $0x30] sm:$0xff]  ;;  %v221_v38 = vld [vmem:[%s828_s5 + $0x38] sm:$0xff]  ;;  %v222_v40 = vld [vmem:[%s828_s5 + $0x40] sm:$0xff] }
   0xa   :  { %558 = vmatpush3.bf16.msra.mxu1 %v557_v9  ;;  %579 = vmatpush3.bf16.msra.mxu0 %v578_v31  ;;  %v587_v39 = vpack.c.bf16 %v221_v38, %v220_v37  ;;  %v223_v41 = vld [vmem:[%s828_s5 + $0x48] sm:$0xff]  ;;  %v224_v43 = vld [vmem:[%s828_s5 + $0x50] sm:$0xff]  ;;  %v225_v44 = vld [vmem:[%s828_s5 + $0x58] sm:$0xff] }
   0xb   :  { %559 = vmatprep.subr.bf16.mxu1 %v616_v4  ;;  %580 = vmatprep.subr.bf16.mxu0 %v616_v4  ;;  %v590_v42 = vpack.c.bf16 %v223_v41, %v222_v40  ;;  %v593_v45 = vpack.c.bf16 %v225_v44, %v224_v43  ;;  %v226_v46 = vld [vmem:[%s828_s5 + $0x60] sm:$0xff]  ;;  %v227_v47 = vld [vmem:[%s828_s5 + $0x68] sm:$0xff]  ;;  %v228_v55 = vld [vmem:[%s828_s5 + $0x70] sm:$0xff] }
   0xc   :  { %v596_v48 = vpack.c.bf16 %v227_v47, %v226_v46  ;;  %v420_v49 = vld [vmem:[%s829_s2] ss:$0 sm:$0xff]  ;;  %v229_v56 = vld [vmem:[%s828_s5 + $0x78] sm:$0xff]  ;;  %v311_v59 = vld [vmem:[%s830_s7 + $0x8] sm:$0xff] }
   0xd   :  { %v599_v57 = vpack.c.bf16 %v229_v56, %v228_v55  ;;  %v310_v58 = vld [vmem:[%s830_s7] sm:$0xff]  ;;  %v312_v3 = vld [vmem:[%s830_s7 + $0x10] sm:$0xff]  ;;  %v313_v5 = vld [vmem:[%s830_s7 + $0x18] sm:$0xff] }
   0xe   :  { %561 = vmatpush3.bf16.msra.mxu1 %v560_v12  ;;  %582 = vmatpush3.bf16.msra.mxu0 %v581_v33  ;;  %v602_v60 = vpack.c.bf16 %v311_v59, %v310_v58  ;;  %v422_v61 = vld [vmem:[%s831_s4] ss:$0 sm:$0xff]  ;;  %v395_v12 = vlaneseq }
   0xf   :  { %562 = vmatprep.subr.bf16.mxu1 %v616_v4  ;;  %583 = vmatprep.subr.bf16.mxu0 %v616_v4  ;;  %v423_v6 = vld [vmem:[%s832_s6] ss:$0 sm:$0xff] }
  0x10   :  { %v396_v13 = vand.u32 127, %v395_v12  ;;  %v424_v14 = vld [vmem:[%s833_s8] ss:$0 sm:$0xff] }
  0x12   :  { %564 = vmatpush3.bf16.msra.mxu1 %v563_v15  ;;  %585 = vmatpush3.bf16.msra.mxu0 %v584_v36  ;;  %vm397_vm6 = vcmp.lt.s32.totalorder %v396_v13, 4 }
  0x13   :  { %565 = vmatprep.subr.bf16.mxu1 %v616_v4  ;;  %586 = vmatprep.subr.bf16.mxu0 %v616_v4 }
  0x16   :  { %567 = vmatpush3.bf16.msra.mxu1 %v566_v18  ;;  %588 = vmatpush3.bf16.msra.mxu0 %v587_v39 }
  0x17   :  { %568 = vmatprep.subr.bf16.mxu1 %v616_v4  ;;  %589 = vmatprep.subr.bf16.mxu0 %v616_v4 }
  0x1a   :  { %570 = vmatpush3.bf16.msra.mxu1 %v569_v21  ;;  %591 = vmatpush3.bf16.msra.mxu0 %v590_v42 }
  0x1b   :  { %571 = vmatprep.subr.bf16.mxu1 %v616_v4  ;;  %592 = vmatprep.subr.bf16.mxu0 %v616_v4 }
  0x1e   :  { %573 = vmatpush3.bf16.msra.mxu1 %v572_v24  ;;  %594 = vmatpush3.bf16.msra.mxu0 %v593_v45 }
  0x1f   :  { %574 = vmatprep.subr.bf16.mxu1 %v616_v4  ;;  %595 = vmatprep.subr.bf16.mxu0 %v616_v4 }
  0x22   :  { %576 = vmatpush3.bf16.msra.mxu1 %v575_v27  ;;  %597 = vmatpush3.bf16.msra.mxu0 %v596_v48 }
  0x23   :  { %601 = vmatprep.subr.bf16.mxu1 %v616_v4  ;;  %598 = vmatprep.subr.bf16.mxu0 %v616_v4 }
  0x26   :  { %600 = vmatpush3.bf16.msra.mxu0 %v599_v57 }
  0xd6   :  { %v111_v50 = vpop.f32.mrb[0].mxu0 }
  0xd7   :  { %v112_v51 = vadd.f32 %v420_v49, %v111_v50  ;;  %v471_v52 = vpop.f32.mrb[1].mxu0 }
  0xd9   :  { %v116_v53 = vmul.f32 0.01, %v112_v51  ;;  %vm115_vm2 = vcmp.ge.f32.partialorder %v112_v51, 0.0 }
  0xdb   :  { %v117_v54 = vsel %vm115_vm2, %v112_v51, %v116_v53 }
  0xdc   :  { %505 = vmatmul.mubr.f32.vlgmr.msra.gmra.mrb[0].mxu1 %v117_v54 }
  0xdd   :  { %550 = vmatprep.mubr.msk.f32.mxu1 %vm615_vm1, %v614_v0  ;;  %603 = vmatpush3.bf16.msra.mxu1 %v602_v60 }
  0xde   :  { %604 = vmatprep.subr.bf16.mxu1 %v616_v4  ;;  %v605_v4 = vpack.c.bf16 %v313_v5, %v312_v3 }
  0xe1   :  { %606 = vmatpush3.bf16.msra.mxu1 %v605_v4 }
 0x1af   :  { %v207_v62 = vpop.f32.mrb[0].mxu1 }
 0x1b0   :  { %v208_v63 = vadd.f32 %v422_v61, %v207_v62  ;;  %v506_v0 = vpop.f32.mrb[1].mxu1 }
 0x1b2   :  { %vm211_vm3 = vcmp.ge.f32.partialorder %v208_v63, 0.0  ;;  %v212_v1 = vmul.f32 0.01, %v208_v63 }
 0x1b4   :  { %v213_v2 = vsel %vm211_vm3, %v208_v63, %v212_v1 }
 0x1b5   :  { %540 = vmatmul.mubr.f32.vlgmr.msra.gmra.mrb[2].mxu0 %v213_v2 }
 0x288   :  { %v303_v7 = vpop.f32.mrb[2].mxu0 }
 0x289   :  { %v304_v8 = vadd.f32 %v423_v6, %v303_v7  ;;  %v541_v9 = vpop.f32.mrb[3].mxu0 }
 0x28b   :  { %vm307_vm4 = vcmp.ge.f32.partialorder %v304_v8, 0.0  ;;  %v308_v10 = vmul.f32 0.01, %v304_v8 }
 0x28d   :  { %v309_v11 = vsel %vm307_vm4, %v304_v8, %v308_v10 }
 0x28e   :  { %551 = vmatmul.mubr.msk.f32.vlgmr.msra.gmra.mrb[2].mxu1 %vm321_vm5, %v309_v11 }
 0x361   :  { %v391_v15 = vpop.f32.mrb[2].mxu1 }
 0x362   :  { %v392_v16 = vadd.f32 %v424_v14, %v391_v15  ;;  %v552_v17 = vpop.f32.mrb[3].mxu1 }
 0x364   :  { %v398_v18 = vsel %vm397_vm6, %v392_v16, -inf }
 0x365   :  { %v400_v19 = vsel %vm399_vm7, %v398_v18, -inf }
 0x366   :  { %401 = vmax.xlane.f32.xlu0 %v400_v19 }
 0x3f3   :  { %v402_v20 = vpop.xlane.xlu0 %401 }
 0x3f4   :  { %v403_v21 = vsub.f32 %v398_v18, %v402_v20 }
 0x3f6   :  { %v404_v22 = vmul.f32 1.442695, %v403_v21 }
 0x3f8   :  { %610 = vpow2.f32 %v404_v22 }
 0x402   :  { %v611_v23 = vpop.eup %610 }
 0x403   :  { %v406_v24 = vsel %vm399_vm7, %v611_v23, 0.0 }
 0x404   :  { %407 = vadd.xlane.f32.xlu0 %v406_v24 }
 0x491   :  { %v408_v25 = vpop.xlane.xlu0 %407 }
 0x492   :  { %612 = vrcp.f32 %v408_v25 }
 0x49c   :  { %v613_v26 = vpop.eup %612 }
 0x49d   :  { %v410_v27 = vmul.f32 %v613_v26, %v408_v25 }
 0x49f   :  { %v411_v28 = vsub.f32 2.0, %v410_v27 }
 0x4a1   :  { %v412_v29 = vmul.f32 %v613_v26, %v411_v28 }
 0x4a3   :  { %v413_v30 = vmul.f32 %v611_v23, %v412_v29 }
 0x4a5   :  { %v414_v31 = vsel %vm397_vm6, %v413_v30, %v392_v16 }
 0x4a6   :  { %415 = vst [vmem:[%s834_s9] sm:$0x3] %v414_v31 }

</bundles_post_ra>
